<compile_context>
chip_gen: v5e
topology: v5e:2x2
jax: 0.10.0
libtpu: 0.0.40
codegen_flags: <defaults>
</compile_context>

<pallas_src>
import functools

import jax
import jax.numpy as jnp
from jax.experimental import pallas as pl
from jax.experimental.pallas import tpu as pltpu

_MIB = 1024 * 1024


# --------------------------------------------------------------------------- #
# Hardware queries (best-effort, always with a conservative fallback)
# --------------------------------------------------------------------------- #
def _vmem_capacity_bytes():
    try:
        return int(pltpu.get_tpu_info().vmem_capacity_bytes)
    except Exception:
        return 64 * _MIB          # conservative: v7x per-core VMEM


def _vmem_limit_bytes():
    phys = _vmem_capacity_bytes()
    if phys >= 128 * _MIB:        # v5e / v6e: use most of the 128 MiB
        return 96 * _MIB
    return min(48 * _MIB, (phys * 3) // 4)   # v7x / unknown


def _num_tensorcores():
    try:
        info = pltpu.get_tpu_info()
    except Exception:
        return 1
    for name in ("num_cores", "core_count", "cores_per_chip", "num_tensorcores"):
        n = getattr(info, name, None)
        if isinstance(n, int) and n > 0:
            return n
    return 1


# --------------------------------------------------------------------------- #
# Tile selection
# --------------------------------------------------------------------------- #
def _pick_batch_tile(bk, dk, g, itemsize):
    """Largest sublane-aligned batch tile whose double-buffered x tile plus the
    lane-padded output double-buffer and resident weight fit the VMEM budget."""
    budget = _vmem_limit_bytes() - 4 * _MIB            # headroom for scheduler
    out_pad = ((g + 127) // 128) * 128                 # (TB, g) pads to 128 lanes
    fixed = 2 * dk * out_pad * 4 + 64 * 1024           # weight (x2 buf) + bias/slack
    per_row = 2 * dk * itemsize + 2 * out_pad * 4      # x dbl-buf + out dbl-buf
    tb = max(8, (budget - fixed) // per_row)
    tb = (tb // 8) * 8
    return int(max(8, min(tb, bk if bk >= 8 else 8)))


# --------------------------------------------------------------------------- #
# Kernel
# --------------------------------------------------------------------------- #
def _logistic_kernel(x_ref, w_ref, b_ref, o_ref, *, flip, approx):
    # x: (TB, Dk), w: (Dk, G), b: (1, G)  ->  z: (TB, G)
    x = x_ref[...].astype(jnp.float32)
    z = jnp.dot(x, w_ref[...], preferred_element_type=jnp.float32) + b_ref[...]
    denom = 1.0 + jnp.exp(z)
    if approx:
        y = pl.reciprocal(denom, approx=True)   # EUP slot, off the VPU critical path
    else:
        y = 1.0 / denom
    if flip:                                     # compile-time branch (inds < 0)
        y = 1.0 - y
    o_ref[...] = y.astype(o_ref.dtype)


# --------------------------------------------------------------------------- #
# Wrapper
# --------------------------------------------------------------------------- #
def logistic_forward(x, weight, bias, *, dims_divisor=1.0, inds=1.0,
                     batch_tile=None, approx_sigmoid=True):
    """Pallas forward pass.

    x:      (B, D) float32 or bfloat16
    weight: (1, D) float32   (PyTorch nn.Linear layout)
    bias:   (1,)   float32
    dims_divisor, inds: Python values baked in at trace time (like the module).
    batch_tile (optional): tile size in *folded* rows.
    Returns y of shape (B, 1) float32.
    """
    B, D = x.shape
    assert weight.shape == (1, D)

    # Fold 1/dims into the weight (tiny (D,1) scale instead of a B*D VPU pass).
    w_col = weight.reshape(D, 1).astype(jnp.float32)
    if float(dims_divisor) != 1.0:
        w_col = w_col * (1.0 / float(dims_divisor))

    # Row folding for small feature dims: pack G rows into the lane dimension so
    # the matmul input / sigmoid / store are lane-dense.
    G = 1
    if D < 128:
        G = max(1, 128 // D)
        while G > 1 and B % G != 0:   # keep it a divisor of B (no padding needed)
            G -= 1
    Dk, Bk = G * D, B // G

    if G > 1:
        x_k = x.reshape(Bk, Dk)                                   # free reshape
        w_k = jnp.kron(jnp.eye(G, dtype=jnp.float32), w_col)      # (G*D, G) block-diag
    else:
        x_k = x
        w_k = w_col
    b_k = jnp.broadcast_to(bias.astype(jnp.float32).reshape(1, 1), (1, G))

    itemsize = jnp.dtype(x_k.dtype).itemsize
    TB = batch_tile if batch_tile is not None else _pick_batch_tile(Bk, Dk, G, itemsize)
    if TB >= Bk:
        TB = Bk                                   # full batch: any TB is legal
    else:
        TB = max(8, (TB // 8) * 8)                # sublane-aligned partial tile
        TB = min(TB, Bk)

    grid = (pl.cdiv(Bk, TB),)
    kernel = functools.partial(_logistic_kernel, flip=(inds < 0),
                               approx=approx_sigmoid)

    in_specs = [
        pl.BlockSpec((TB, Dk), lambda i: (i, 0)),   # x: tiled over (folded) batch
        pl.BlockSpec((Dk, G), lambda i: (0, 0)),    # weight: resident in VMEM
        pl.BlockSpec((1, G), lambda i: (0, 0)),     # bias: resident in VMEM
    ]
    out_specs = pl.BlockSpec((TB, G), lambda i: (i, 0))
    out_shape = jax.ShapeDtypeStruct((Bk, G), jnp.float32)
    vmem_limit = _vmem_limit_bytes()

    # Dimension semantics: split the batch grid across TensorCores when the chip
    # has more than one (v7x); otherwise plain "parallel".  Fall back safely if
    # CORE_PARALLEL is unavailable or rejected on this chip.
    semantics_options = []
    core_parallel = getattr(pltpu, "CORE_PARALLEL", None)
    if core_parallel is not None and _num_tensorcores() >= 2 and grid[0] >= 2:
        semantics_options.append((core_parallel,))
    semantics_options.append(("parallel",))

    y = None
    last_err = None
    for sem in semantics_options:
        try:
            y = pl.pallas_call(
                kernel,
                out_shape=out_shape,
                grid=grid,
                in_specs=in_specs,
                out_specs=out_specs,
                compiler_params=pltpu.CompilerParams(
                    dimension_semantics=sem,
                    vmem_limit_bytes=vmem_limit,
                ),
            )(x_k, w_k, b_k)
            break
        except Exception as e:        # fall back to the next semantics option
            last_err = e
            y = None
    if y is None:
        raise last_err

    return y.reshape(B, 1)


def logistic_reference(x, weight, bias, *, dims_divisor=1.0, inds=1.0):
    """Plain-JAX reference matching the PyTorch module."""
    z = (x.astype(jnp.float32) / dims_divisor) @ weight.T + bias
    y = 1.0 / (1.0 + jnp.exp(z))
    if inds < 0:
        y = 1.0 - y
    return y


# --------------------------------------------------------------------------- #
# Self-test
# --------------------------------------------------------------------------- #
if __name__ == "__main__":
    root_key = jax.random.PRNGKey(0)

    def run_case(B, D, dims_divisor, inds, batch_tile=None, x_dtype=jnp.float32):
        case_key = jax.random.fold_in(root_key, B * 1000 + D)
        kx, kw, kb = jax.random.split(case_key, 3)
        x = jax.random.normal(kx, (B, D), jnp.float32)
        bound = 1.0 / (D ** 0.5)    # nn.Linear(dims, 1) init: U(-1/sqrt(D), 1/sqrt(D))
        weight = jax.random.uniform(kw, (1, D), jnp.float32, -bound, bound)
        bias = jax.random.uniform(kb, (1,), jnp.float32, -bound, bound)

        x_in = x.astype(x_dtype)
        y = logistic_forward(x_in, weight, bias, dims_divisor=dims_divisor,
                             inds=inds, batch_tile=batch_tile)
        y = jax.block_until_ready(y)
        y_ref = logistic_reference(x_in.astype(jnp.float32), weight, bias,
                                   dims_divisor=dims_divisor, inds=inds)
        assert y.shape == (B, 1), y.shape
        # Tolerance relaxed for the approximate (EUP) reciprocal in the kernel.
        assert jnp.allclose(y, y_ref, atol=2e-3, rtol=2e-3), (y, y_ref)

    # Small-D (row-folded, lane-dense) cases; both module configurations.
    run_case(24, 32, 1.0, 1.0)                      # auto tile, grid=(1,)
    run_case(24, 32, 32.0, -1.0)                    # divide_dims=True, inds<0
    run_case(256, 32, 32.0, -1.0, batch_tile=16)    # grid=(4,) -> pipelined
    # D >= 128: no folding, MXU matvec path.
    run_case(64, 256, 1.0, 1.0, batch_tile=16)      # grid=(4,)
    # bfloat16 input (halves HBM traffic); kernel upcasts to f32 before the dot.
    run_case(256, 32, 1.0, 1.0, batch_tile=16, x_dtype=jnp.bfloat16)

    print("KERNEL_OK")
</pallas_src>

<mosaic_0001>
module attributes {stable_mosaic.version = 11 : i64} {
  func.func @_logistic_kernel(%arg0: i32, %arg1: memref<6x128xf32, #tpu.memory_space<vmem>>, %arg2: memref<128x4xf32, #tpu.memory_space<vmem>>, %arg3: memref<1x4xf32, #tpu.memory_space<vmem>>, %arg4: memref<6x4xf32, #tpu.memory_space<vmem>>) attributes {dimension_semantics = [#tpu.dimension_semantics<parallel>], iteration_bounds = array<i64: 1>, scalar_prefetch = 0 : i64, scratch_operands = 0 : i64, tpu.core_type = #tpu.core_type<tc>, window_params = [{transform_indices = @transform_0, window_bounds = array<i64: 6, 128>}, {pipeline_mode = #tpu.pipeline_mode<synchronous>, transform_indices = @transform_1, window_bounds = array<i64: 128, 4>}, {pipeline_mode = #tpu.pipeline_mode<synchronous>, transform_indices = @transform_2, window_bounds = array<i64: 1, 4>}, {transform_indices = @transform_3, window_bounds = array<i64: 6, 4>}]} {
    %c0 = arith.constant 0 : index
    %c0_0 = arith.constant 0 : index
    %0 = vector.load %arg1[%c0, %c0_0] : memref<6x128xf32, #tpu.memory_space<vmem>>, vector<6x128xf32>
    %c0_1 = arith.constant 0 : index
    %c0_2 = arith.constant 0 : index
    %1 = vector.load %arg2[%c0_1, %c0_2] : memref<128x4xf32, #tpu.memory_space<vmem>>, vector<128x4xf32>
    %cst = arith.constant dense<0.000000e+00> : vector<6x4xf32>
    %2 = tpu.matmul %0, %1, %cst {dimension_numbers = #tpu.dot_dimension_numbers<[1], [0], [0], [1], [0, 0, 1, 1], [], []>} : vector<6x128xf32>, vector<128x4xf32>, vector<6x4xf32> -> vector<6x4xf32>
    %c0_3 = arith.constant 0 : index
    %c0_4 = arith.constant 0 : index
    %3 = vector.load %arg3[%c0_3, %c0_4] : memref<1x4xf32, #tpu.memory_space<vmem>>, vector<1x4xf32>
    %4 = vector.broadcast %3 : vector<1x4xf32> to vector<6x4xf32>
    %5 = arith.addf %2, %4 : vector<6x4xf32>
    %6 = math.exp %5 : vector<6x4xf32>
    %cst_5 = arith.constant 1.000000e+00 : f32
    %7 = vector.broadcast %cst_5 : f32 to vector<6x4xf32>
    %8 = arith.addf %7, %6 : vector<6x4xf32>
    %9 = tpu.reciprocal %8 {approx = true} : vector<6x4xf32> -> vector<6x4xf32>
    %c0_6 = arith.constant 0 : index
    %c0_7 = arith.constant 0 : index
    %10 = vector.load %arg4[%c0_6, %c0_7] : memref<6x4xf32, #tpu.memory_space<vmem>>, vector<6x4xf32>
    tpu.vector_store %arg4[%c0_6, %c0_7], %9 {strides = array<i32>} : memref<6x4xf32, #tpu.memory_space<vmem>>, vector<6x4xf32>,
    return
  }
  func.func @transform_0(%arg0: i32) -> (i32, i32) {
    %c0_i32 = arith.constant 0 : i32
    %c0_i32_0 = arith.constant 0 : i32
    return %arg0, %c0_i32 : i32, i32
  }
  func.func @transform_1(%arg0: i32) -> (i32, i32) {
    %c0_i32 = arith.constant 0 : i32
    %c0_i32_0 = arith.constant 0 : i32
    %c0_i32_1 = arith.constant 0 : i32
    return %c0_i32, %c0_i32_0 : i32, i32
  }
  func.func @transform_2(%arg0: i32) -> (i32, i32) {
    %c0_i32 = arith.constant 0 : i32
    %c0_i32_0 = arith.constant 0 : i32
    %c0_i32_1 = arith.constant 0 : i32
    return %c0_i32, %c0_i32_0 : i32, i32
  }
  func.func @transform_3(%arg0: i32) -> (i32, i32) {
    %c0_i32 = arith.constant 0 : i32
    %c0_i32_0 = arith.constant 0 : i32
    return %arg0, %c0_i32 : i32, i32
  }
}

</mosaic_0001>

<bundles_post_ra>
// kernel: tpu_custom_call.1
= control target key start
LH: loop header
LB: loop body
LE: loop exit
PB: predicated region body
PF: predicated region fallthrough
CT: control target
= control target key end

     0   :  { %vm59_vm0 = vcmask 29696   ;;  %s147_s1 = inlined_call_operand.vmem [shape: f32[128,4], index: 1, kind: input, shape index: {}]   ;;  %s148_s2 = inlined_call_operand.vmem [shape: f32[1,4], index: 2, kind: input, shape index: {}]   ;;  %s149_s0 = inlined_call_operand.vmem [shape: f32[6,128], index: 0, kind: input, shape index: {}]   ;;  %s150_s3 = inlined_call_operand.vmem [shape: f32[6,4], index: 3, kind: output, shape index: {}]  }
   0x1   :  { %v30_v0 = vld [vmem:[%s147_s1 + $0x78] sm:$0xff]  ;;  %v29_v1 = vld [vmem:[%s147_s1 + $0x70] sm:$0xff]  ;;  %v28_v2 = vld [vmem:[%s147_s1 + $0x68] sm:$0xff] }
   0x2   :  { %35 = vmatpush.msra.mxu0 %v30_v0  ;;  %v27_v3 = vld [vmem:[%s147_s1 + $0x60] sm:$0xff]  ;;  %v26_v4 = vld [vmem:[%s147_s1 + $0x58] sm:$0xff]  ;;  %v25_v5 = vld [vmem:[%s147_s1 + $0x50] sm:$0xff] }
   0x3   :  { %v24_v6 = vld [vmem:[%s147_s1 + $0x48] sm:$0xff]  ;;  %v23_v7 = vld [vmem:[%s147_s1 + $0x40] sm:$0xff]  ;;  %v22_v8 = vld [vmem:[%s147_s1 + $0x38] sm:$0xff] }
   0x4   :  { %36 = vmatpush.msra.mxu0 %v29_v1  ;;  %v21_v9 = vld [vmem:[%s147_s1 + $0x30] sm:$0xff]  ;;  %v20_v10 = vld [vmem:[%s147_s1 + $0x28] sm:$0xff]  ;;  %v19_v11 = vld [vmem:[%s147_s1 + $0x20] sm:$0xff] }
   0x5   :  { %v18_v12 = vld [vmem:[%s147_s1 + $0x18] sm:$0xff]  ;;  %v17_v13 = vld [vmem:[%s147_s1 + $0x10] sm:$0xff]  ;;  %v16_v14 = vld [vmem:[%s147_s1 + $0x8] sm:$0xff] }
   0x6   :  { %37 = vmatpush.msra.mxu0 %v28_v2  ;;  %v15_v15 = vld [vmem:[%s147_s1] sm:$0xff] }
   0x7   :  { %v14_v16 = vld [vmem:[%s149_s0] sm:$0x3f] }
   0x8   :  { %38 = vmatpush.msra.mxu0 %v27_v3  ;;  %v65_v17 = vld [vmem:[%s148_s2] ss:$0 sm:$0xff] }
   0xa   :  { %39 = vmatpush.msra.mxu0 %v26_v4 }
   0xc   :  { %40 = vmatpush.msra.mxu0 %v25_v5 }
   0xe   :  { %41 = vmatpush.msra.mxu0 %v24_v6 }
  0x10   :  { %42 = vmatpush.msra.mxu0 %v23_v7 }
  0x12   :  { %43 = vmatpush.msra.mxu0 %v22_v8 }
  0x14   :  { %44 = vmatpush.msra.mxu0 %v21_v9 }
  0x16   :  { %45 = vmatpush.msra.mxu0 %v20_v10 }
  0x18   :  { %46 = vmatpush.msra.mxu0 %v19_v11 }
  0x1a   :  { %47 = vmatpush.msra.mxu0 %v18_v12 }
  0x1c   :  { %48 = vmatpush.msra.mxu0 %v17_v13 }
  0x1e   :  { %49 = vmatpush.msra.mxu0 %v16_v14 }
  0x20   :  { %50 = vmatpush.msra.mxu0 %v15_v15 }
  0x21   :  { %51 = vmatmul.f32.vlgmr.msra.gmra.mxu0 %v14_v16 }
  0x9e   :  { %v52_v18 = vpop.f32.mrf.mxu0 }
  0x9f   :  { %v53_v19 = vadd.f32 %v65_v17, %v52_v18 }
  0xa1   :  { %v55_v20 = vmul.f32 1.442695, %v53_v19 }
  0xa3   :  { %66 = vpow2.f32 %v55_v20 }
  0xa9   :  { %v67_v21 = vpop.eup %66 }
  0xaa   :  { %v57_v22 = vadd.f32 1.0, %v67_v21 }
  0xac   :  { %68 = vrcp.f32 %v57_v22 }
  0xb2   :  { %v69_v23 = vpop.eup %68 }
  0xb3   :  { %60 = vst.msk [vmem:[%s150_s3] sm:$0x3f] %vm59_vm0, %v69_v23 }

</bundles_post_ra>
